<compile_context>
chip_gen: v7x
topology: tpu7x:2x2x1
jax: 0.10.0
libtpu: 0.0.40
codegen_flags: <defaults>
</compile_context>

<pallas_src>
import functools

import jax
import jax.numpy as jnp
import numpy as np
from jax import lax
from jax.experimental import pallas as pl
from jax.experimental.pallas import tpu as pltpu


def conv3x3_kernel(w_ref, x_ref, o_ref, *, N, C, H, W):
    """3x3 'same' conv, out_channels == 1, whole batch in one invocation.

    w_ref : SMEM (C*9,) f32        flattened conv weights (single output channel).
    x_ref : VMEM (C, H, N*W) f32   batch folded into lanes: x_ref[c,h,n*W+w] = x[n,c,h,w].
    o_ref : VMEM (N, 1, H, W) f32  per-batch output, written in-kernel.
    """
    L = N * W  # folded lane width

    # ---- boundary masks (zero-padding semantics), built once ----------------
    row_idx = lax.broadcasted_iota(jnp.int32, (H, L), 0)
    w_in = lax.broadcasted_iota(jnp.int32, (H, L), 1) % W
    mask_dy = {
        -1: row_idx >= 1,        # source row h-1 invalid at h == 0
        +1: row_idx <= H - 2,    # source row h+1 invalid at h == H-1
    }
    mask_dx = {
        -1: w_in >= 1,           # source col w-1 invalid at w == 0 (also kills batch leak/wrap)
        +1: w_in <= W - 2,       # source col w+1 invalid at w == W-1
    }

    # ---- pre-rolled, row-masked input slabs: A[c][dy][h,l] = x_hat[c,h+dy,l] --
    A = []
    for c in range(C):
        xc = x_ref[c]                                          # (H, L) load
        rows = {0: xc}
        for dy in (-1, +1):
            rolled = pltpu.roll(xc, shift=(-dy) % H, axis=0)   # sublane roll (XLU)
            rows[dy] = jnp.where(mask_dy[dy], rolled, 0.0)
        A.append(rows)

    # ---- factorized accumulation over the lane (kx) shift --------------------
    # acc = sum_dx mask_dx * lane_roll( sum_{c,dy} w[c,dy,dx] * A[c][dy], -dx )
    contribs = []
    for dx in (-1, 0, +1):
        chan_sums = []
        for c in range(C):
            p = None
            for dy in (-1, 0, +1):
                wv = w_ref[c * 9 + (dy + 1) * 3 + (dx + 1)]    # scalar from SMEM
                term = wv * A[c][dy]
                p = term if p is None else p + term
            chan_sums.append(p)                                # independent chains -> ILP
        t_dx = chan_sums[0] + chan_sums[1] + chan_sums[2]
        if dx == 0:
            contribs.append(t_dx)
        else:
            rolled = pltpu.roll(t_dx, shift=(-dx) % L, axis=1)  # lane roll (XLU)
            contribs.append(jnp.where(mask_dx[dx], rolled, 0.0))
    acc = contribs[0] + contribs[1] + contribs[2]               # (H, L), full lane width

    # ---- per-batch store (narrowing only happens here) -----------------------
    for b in range(N):
        chunk = acc if b == 0 else pltpu.roll(acc, shift=(-b * W) % L, axis=1)
        o_ref[b, 0] = chunk[:, :W].astype(o_ref.dtype)


def conv2d_3x3_same(x, weight):
    """x: (N, 3, H, W) f32; weight: (1, 3, 3, 3) f32 -> (N, 1, H, W) f32."""
    N, C, H, W = x.shape
    O, CI, KH, KW = weight.shape
    # Module spec: Conv2d(3, 1, 3, stride=1, padding=1, bias=False).
    assert O == 1 and CI == C and KH == 3 and KW == 3

    # Lane-dense, batch-folded input layout: (C, H, N*W).
    x_slab = jnp.transpose(x, (1, 2, 0, 3)).reshape(C, H, N * W).astype(jnp.float32)
    w_flat = weight.reshape(-1).astype(jnp.float32)            # (C*9,) scalars -> SMEM

    kernel = functools.partial(conv3x3_kernel, N=N, C=C, H=H, W=W)

    out = pl.pallas_call(
        kernel,
        out_shape=jax.ShapeDtypeStruct((N, 1, H, W), jnp.float32),
        in_specs=[
            pl.BlockSpec(memory_space=pltpu.MemorySpace.SMEM),  # weights
            pl.BlockSpec(memory_space=pltpu.MemorySpace.VMEM),  # folded x, one DMA
        ],
        out_specs=pl.BlockSpec(memory_space=pltpu.MemorySpace.VMEM),
        compiler_params=pltpu.CompilerParams(
            vmem_limit_bytes=32 * 1024 * 1024),
    )(w_flat, x_slab)
    return out.astype(x.dtype)


if __name__ == "__main__":
    key = jax.random.PRNGKey(0)
    kx_key, kw_key = jax.random.split(key)

    # Small shapes consistent with the module: batch=2, in_channels=3, spatial=16.
    N, C, H, W = 2, 3, 16, 16
    x = jax.random.normal(kx_key, (N, C, H, W), dtype=jnp.float32)
    # Same shape as nn.Conv2d(3, 1, 3, bias=False).weight.
    weight = jax.random.normal(kw_key, (1, C, 3, 3), dtype=jnp.float32) * 0.1

    out = conv2d_3x3_same(x, weight)
    out = jax.block_until_ready(out)

    # Reference: XLA conv with PyTorch NCHW / OIHW semantics.
    ref = lax.conv_general_dilated(
        x, weight, window_strides=(1, 1), padding=((1, 1), (1, 1)),
        dimension_numbers=("NCHW", "OIHW", "NCHW"))
    assert out.shape == (N, 1, H, W), out.shape
    np.testing.assert_allclose(np.asarray(out), np.asarray(ref), rtol=1e-5, atol=1e-5)

    print("KERNEL_OK")
</pallas_src>

<mosaic_0001>
module attributes {stable_mosaic.version = 11 : i64} {
  func.func @conv3x3_kernel(%arg0: memref<27xf32, #tpu.memory_space<smem>>, %arg1: memref<3x16x32xf32, #tpu.memory_space<vmem>>, %arg2: memref<2x1x16x16xf32, #tpu.memory_space<vmem>>) attributes {dimension_semantics = [], scalar_prefetch = 0 : i64, scratch_operands = 0 : i64, tpu.core_type = #tpu.core_type<tc>} {
    %0 = tpu.iota {dimensions = array<i32: 0>} : vector<16x32xi32>
    %1 = tpu.iota {dimensions = array<i32: 1>} : vector<16x32xi32>
    %c16_i32 = arith.constant 16 : i32
    %c0_i32 = arith.constant 0 : i32
    %2 = arith.cmpi eq, %c16_i32, %c0_i32 : i32
    %c1_i32 = arith.constant 1 : i32
    %3 = arith.select %2, %c1_i32, %c16_i32 : i32
    %4 = vector.broadcast %3 : i32 to vector<16x32xi32>
    %5 = arith.remsi %1, %4 : vector<16x32xi32>
    %c0_i32_0 = arith.constant 0 : i32
    %6 = vector.broadcast %c0_i32_0 : i32 to vector<16x32xi32>
    %7 = arith.cmpi ne, %5, %6 : vector<16x32xi32>
    %c0_i32_1 = arith.constant 0 : i32
    %8 = vector.broadcast %c0_i32_1 : i32 to vector<16x32xi32>
    %9 = arith.cmpi slt, %5, %8 : vector<16x32xi32>
    %c0_i32_2 = arith.constant 0 : i32
    %10 = arith.cmpi slt, %3, %c0_i32_2 : i32
    %11 = vector.broadcast %10 : i1 to vector<16x32xi1>
    %12 = vector.broadcast %11 : vector<16x32xi1> to vector<16x32xi1>
    %13 = arith.xori %9, %12 : vector<16x32xi1>
    %14 = arith.andi %13, %7 : vector<16x32xi1>
    %15 = vector.broadcast %3 : i32 to vector<16x32xi32>
    %16 = arith.addi %5, %15 : vector<16x32xi32>
    %17 = arith.select %14, %16, %5 : vector<16x32xi1>, vector<16x32xi32>
    %c1_i32_3 = arith.constant 1 : i32
    %18 = vector.broadcast %c1_i32_3 : i32 to vector<16x32xi32>
    %19 = arith.cmpi sge, %0, %18 : vector<16x32xi32>
    %c14_i32 = arith.constant 14 : i32
    %20 = vector.broadcast %c14_i32 : i32 to vector<16x32xi32>
    %21 = arith.cmpi sle, %0, %20 : vector<16x32xi32>
    %c1_i32_4 = arith.constant 1 : i32
    %22 = vector.broadcast %c1_i32_4 : i32 to vector<16x32xi32>
    %23 = arith.cmpi sge, %17, %22 : vector<16x32xi32>
    %c14_i32_5 = arith.constant 14 : i32
    %24 = vector.broadcast %c14_i32_5 : i32 to vector<16x32xi32>
    %25 = arith.cmpi sle, %17, %24 : vector<16x32xi32>
    %c0 = arith.constant 0 : index
    %c0_6 = arith.constant 0 : index
    %c0_7 = arith.constant 0 : index
    %26 = vector.load %arg1[%c0, %c0_6, %c0_7] : memref<3x16x32xf32, #tpu.memory_space<vmem>>, vector<1x16x32xf32>
    %27 = vector.shape_cast %26 : vector<1x16x32xf32> to vector<16x32xf32>
    %c1_i32_8 = arith.constant 1 : i32
    %28 = tpu.dynamic_rotate %27 by %c1_i32_8 dim 0 : vector<16x32xf32>, i32 -> vector<16x32xf32>
    %cst = arith.constant 0.000000e+00 : f32
    %29 = vector.broadcast %cst : f32 to vector<16x32xf32>
    %30 = arith.select %19, %28, %29 : vector<16x32xi1>, vector<16x32xf32>
    %c15_i32 = arith.constant 15 : i32
    %31 = tpu.dynamic_rotate %27 by %c15_i32 dim 0 : vector<16x32xf32>, i32 -> vector<16x32xf32>
    %cst_9 = arith.constant 0.000000e+00 : f32
    %32 = vector.broadcast %cst_9 : f32 to vector<16x32xf32>
    %33 = arith.select %21, %31, %32 : vector<16x32xi1>, vector<16x32xf32>
    %c1 = arith.constant 1 : index
    %c0_10 = arith.constant 0 : index
    %c0_11 = arith.constant 0 : index
    %34 = vector.load %arg1[%c1, %c0_10, %c0_11] : memref<3x16x32xf32, #tpu.memory_space<vmem>>, vector<1x16x32xf32>
    %35 = vector.shape_cast %34 : vector<1x16x32xf32> to vector<16x32xf32>
    %c1_i32_12 = arith.constant 1 : i32
    %36 = tpu.dynamic_rotate %35 by %c1_i32_12 dim 0 : vector<16x32xf32>, i32 -> vector<16x32xf32>
    %cst_13 = arith.constant 0.000000e+00 : f32
    %37 = vector.broadcast %cst_13 : f32 to vector<16x32xf32>
    %38 = arith.select %19, %36, %37 : vector<16x32xi1>, vector<16x32xf32>
    %c15_i32_14 = arith.constant 15 : i32
    %39 = tpu.dynamic_rotate %35 by %c15_i32_14 dim 0 : vector<16x32xf32>, i32 -> vector<16x32xf32>
    %cst_15 = arith.constant 0.000000e+00 : f32
    %40 = vector.broadcast %cst_15 : f32 to vector<16x32xf32>
    %41 = arith.select %21, %39, %40 : vector<16x32xi1>, vector<16x32xf32>
    %c2 = arith.constant 2 : index
    %c0_16 = arith.constant 0 : index
    %c0_17 = arith.constant 0 : index
    %42 = vector.load %arg1[%c2, %c0_16, %c0_17] : memref<3x16x32xf32, #tpu.memory_space<vmem>>, vector<1x16x32xf32>
    %43 = vector.shape_cast %42 : vector<1x16x32xf32> to vector<16x32xf32>
    %c1_i32_18 = arith.constant 1 : i32
    %44 = tpu.dynamic_rotate %43 by %c1_i32_18 dim 0 : vector<16x32xf32>, i32 -> vector<16x32xf32>
    %cst_19 = arith.constant 0.000000e+00 : f32
    %45 = vector.broadcast %cst_19 : f32 to vector<16x32xf32>
    %46 = arith.select %19, %44, %45 : vector<16x32xi1>, vector<16x32xf32>
    %c15_i32_20 = arith.constant 15 : i32
    %47 = tpu.dynamic_rotate %43 by %c15_i32_20 dim 0 : vector<16x32xf32>, i32 -> vector<16x32xf32>
    %cst_21 = arith.constant 0.000000e+00 : f32
    %48 = vector.broadcast %cst_21 : f32 to vector<16x32xf32>
    %49 = arith.select %21, %47, %48 : vector<16x32xi1>, vector<16x32xf32>
    %c0_22 = arith.constant 0 : index
    %50 = memref.load %arg0[%c0_22] : memref<27xf32, #tpu.memory_space<smem>>
    %51 = vector.broadcast %50 : f32 to vector<16x32xf32>
    %52 = arith.mulf %51, %30 : vector<16x32xf32>
    %c3 = arith.constant 3 : index
    %53 = memref.load %arg0[%c3] : memref<27xf32, #tpu.memory_space<smem>>
    %54 = vector.broadcast %53 : f32 to vector<16x32xf32>
    %55 = arith.mulf %54, %27 : vector<16x32xf32>
    %56 = arith.addf %52, %55 : vector<16x32xf32>
    %c6 = arith.constant 6 : index
    %57 = memref.load %arg0[%c6] : memref<27xf32, #tpu.memory_space<smem>>
    %58 = vector.broadcast %57 : f32 to vector<16x32xf32>
    %59 = arith.mulf %58, %33 : vector<16x32xf32>
    %60 = arith.addf %56, %59 : vector<16x32xf32>
    %c9 = arith.constant 9 : index
    %61 = memref.load %arg0[%c9] : memref<27xf32, #tpu.memory_space<smem>>
    %62 = vector.broadcast %61 : f32 to vector<16x32xf32>
    %63 = arith.mulf %62, %38 : vector<16x32xf32>
    %c12 = arith.constant 12 : index
    %64 = memref.load %arg0[%c12] : memref<27xf32, #tpu.memory_space<smem>>
    %65 = vector.broadcast %64 : f32 to vector<16x32xf32>
    %66 = arith.mulf %65, %35 : vector<16x32xf32>
    %67 = arith.addf %63, %66 : vector<16x32xf32>
    %c15 = arith.constant 15 : index
    %68 = memref.load %arg0[%c15] : memref<27xf32, #tpu.memory_space<smem>>
    %69 = vector.broadcast %68 : f32 to vector<16x32xf32>
    %70 = arith.mulf %69, %41 : vector<16x32xf32>
    %71 = arith.addf %67, %70 : vector<16x32xf32>
    %c18 = arith.constant 18 : index
    %72 = memref.load %arg0[%c18] : memref<27xf32, #tpu.memory_space<smem>>
    %73 = vector.broadcast %72 : f32 to vector<16x32xf32>
    %74 = arith.mulf %73, %46 : vector<16x32xf32>
    %c21 = arith.constant 21 : index
    %75 = memref.load %arg0[%c21] : memref<27xf32, #tpu.memory_space<smem>>
    %76 = vector.broadcast %75 : f32 to vector<16x32xf32>
    %77 = arith.mulf %76, %43 : vector<16x32xf32>
    %78 = arith.addf %74, %77 : vector<16x32xf32>
    %c24 = arith.constant 24 : index
    %79 = memref.load %arg0[%c24] : memref<27xf32, #tpu.memory_space<smem>>
    %80 = vector.broadcast %79 : f32 to vector<16x32xf32>
    %81 = arith.mulf %80, %49 : vector<16x32xf32>
    %82 = arith.addf %78, %81 : vector<16x32xf32>
    %83 = arith.addf %60, %71 : vector<16x32xf32>
    %84 = arith.addf %83, %82 : vector<16x32xf32>
    %c1_i32_23 = arith.constant 1 : i32
    %85 = tpu.dynamic_rotate %84 by %c1_i32_23 dim 1 : vector<16x32xf32>, i32 -> vector<16x32xf32>
    %cst_24 = arith.constant 0.000000e+00 : f32
    %86 = vector.broadcast %cst_24 : f32 to vector<16x32xf32>
    %87 = arith.select %23, %85, %86 : vector<16x32xi1>, vector<16x32xf32>
    %c1_25 = arith.constant 1 : index
    %88 = memref.load %arg0[%c1_25] : memref<27xf32, #tpu.memory_space<smem>>
    %89 = vector.broadcast %88 : f32 to vector<16x32xf32>
    %90 = arith.mulf %89, %30 : vector<16x32xf32>
    %c4 = arith.constant 4 : index
    %91 = memref.load %arg0[%c4] : memref<27xf32, #tpu.memory_space<smem>>
    %92 = vector.broadcast %91 : f32 to vector<16x32xf32>
    %93 = arith.mulf %92, %27 : vector<16x32xf32>
    %94 = arith.addf %90, %93 : vector<16x32xf32>
    %c7 = arith.constant 7 : index
    %95 = memref.load %arg0[%c7] : memref<27xf32, #tpu.memory_space<smem>>
    %96 = vector.broadcast %95 : f32 to vector<16x32xf32>
    %97 = arith.mulf %96, %33 : vector<16x32xf32>
    %98 = arith.addf %94, %97 : vector<16x32xf32>
    %c10 = arith.constant 10 : index
    %99 = memref.load %arg0[%c10] : memref<27xf32, #tpu.memory_space<smem>>
    %100 = vector.broadcast %99 : f32 to vector<16x32xf32>
    %101 = arith.mulf %100, %38 : vector<16x32xf32>
    %c13 = arith.constant 13 : index
    %102 = memref.load %arg0[%c13] : memref<27xf32, #tpu.memory_space<smem>>
    %103 = vector.broadcast %102 : f32 to vector<16x32xf32>
    %104 = arith.mulf %103, %35 : vector<16x32xf32>
    %105 = arith.addf %101, %104 : vector<16x32xf32>
    %c16 = arith.constant 16 : index
    %106 = memref.load %arg0[%c16] : memref<27xf32, #tpu.memory_space<smem>>
    %107 = vector.broadcast %106 : f32 to vector<16x32xf32>
    %108 = arith.mulf %107, %41 : vector<16x32xf32>
    %109 = arith.addf %105, %108 : vector<16x32xf32>
    %c19 = arith.constant 19 : index
    %110 = memref.load %arg0[%c19] : memref<27xf32, #tpu.memory_space<smem>>
    %111 = vector.broadcast %110 : f32 to vector<16x32xf32>
    %112 = arith.mulf %111, %46 : vector<16x32xf32>
    %c22 = arith.constant 22 : index
    %113 = memref.load %arg0[%c22] : memref<27xf32, #tpu.memory_space<smem>>
    %114 = vector.broadcast %113 : f32 to vector<16x32xf32>
    %115 = arith.mulf %114, %43 : vector<16x32xf32>
    %116 = arith.addf %112, %115 : vector<16x32xf32>
    %c25 = arith.constant 25 : index
    %117 = memref.load %arg0[%c25] : memref<27xf32, #tpu.memory_space<smem>>
    %118 = vector.broadcast %117 : f32 to vector<16x32xf32>
    %119 = arith.mulf %118, %49 : vector<16x32xf32>
    %120 = arith.addf %116, %119 : vector<16x32xf32>
    %121 = arith.addf %98, %109 : vector<16x32xf32>
    %122 = arith.addf %121, %120 : vector<16x32xf32>
    %c2_26 = arith.constant 2 : index
    %123 = memref.load %arg0[%c2_26] : memref<27xf32, #tpu.memory_space<smem>>
    %124 = vector.broadcast %123 : f32 to vector<16x32xf32>
    %125 = arith.mulf %124, %30 : vector<16x32xf32>
    %c5 = arith.constant 5 : index
    %126 = memref.load %arg0[%c5] : memref<27xf32, #tpu.memory_space<smem>>
    %127 = vector.broadcast %126 : f32 to vector<16x32xf32>
    %128 = arith.mulf %127, %27 : vector<16x32xf32>
    %129 = arith.addf %125, %128 : vector<16x32xf32>
    %c8 = arith.constant 8 : index
    %130 = memref.load %arg0[%c8] : memref<27xf32, #tpu.memory_space<smem>>
    %131 = vector.broadcast %130 : f32 to vector<16x32xf32>
    %132 = arith.mulf %131, %33 : vector<16x32xf32>
    %133 = arith.addf %129, %132 : vector<16x32xf32>
    %c11 = arith.constant 11 : index
    %134 = memref.load %arg0[%c11] : memref<27xf32, #tpu.memory_space<smem>>
    %135 = vector.broadcast %134 : f32 to vector<16x32xf32>
    %136 = arith.mulf %135, %38 : vector<16x32xf32>
    %c14 = arith.constant 14 : index
    %137 = memref.load %arg0[%c14] : memref<27xf32, #tpu.memory_space<smem>>
    %138 = vector.broadcast %137 : f32 to vector<16x32xf32>
    %139 = arith.mulf %138, %35 : vector<16x32xf32>
    %140 = arith.addf %136, %139 : vector<16x32xf32>
    %c17 = arith.constant 17 : index
    %141 = memref.load %arg0[%c17] : memref<27xf32, #tpu.memory_space<smem>>
    %142 = vector.broadcast %141 : f32 to vector<16x32xf32>
    %143 = arith.mulf %142, %41 : vector<16x32xf32>
    %144 = arith.addf %140, %143 : vector<16x32xf32>
    %c20 = arith.constant 20 : index
    %145 = memref.load %arg0[%c20] : memref<27xf32, #tpu.memory_space<smem>>
    %146 = vector.broadcast %145 : f32 to vector<16x32xf32>
    %147 = arith.mulf %146, %46 : vector<16x32xf32>
    %c23 = arith.constant 23 : index
    %148 = memref.load %arg0[%c23] : memref<27xf32, #tpu.memory_space<smem>>
    %149 = vector.broadcast %148 : f32 to vector<16x32xf32>
    %150 = arith.mulf %149, %43 : vector<16x32xf32>
    %151 = arith.addf %147, %150 : vector<16x32xf32>
    %c26 = arith.constant 26 : index
    %152 = memref.load %arg0[%c26] : memref<27xf32, #tpu.memory_space<smem>>
    %153 = vector.broadcast %152 : f32 to vector<16x32xf32>
    %154 = arith.mulf %153, %49 : vector<16x32xf32>
    %155 = arith.addf %151, %154 : vector<16x32xf32>
    %156 = arith.addf %133, %144 : vector<16x32xf32>
    %157 = arith.addf %156, %155 : vector<16x32xf32>
    %c31_i32 = arith.constant 31 : i32
    %158 = tpu.dynamic_rotate %157 by %c31_i32 dim 1 : vector<16x32xf32>, i32 -> vector<16x32xf32>
    %cst_27 = arith.constant 0.000000e+00 : f32
    %159 = vector.broadcast %cst_27 : f32 to vector<16x32xf32>
    %160 = arith.select %25, %158, %159 : vector<16x32xi1>, vector<16x32xf32>
    %161 = arith.addf %87, %122 : vector<16x32xf32>
    %162 = arith.addf %161, %160 : vector<16x32xf32>
    %163 = vector.extract_strided_slice %162 {offsets = [0, 0], sizes = [16, 16], strides = [1, 1]} : vector<16x32xf32> to vector<16x16xf32>
    %c0_28 = arith.constant 0 : index
    %c0_29 = arith.constant 0 : index
    %c0_30 = arith.constant 0 : index
    %c0_31 = arith.constant 0 : index
    %164 = vector.load %arg2[%c0_28, %c0_29, %c0_30, %c0_31] : memref<2x1x16x16xf32, #tpu.memory_space<vmem>>, vector<1x1x16x16xf32>
    %165 = vector.shape_cast %164 : vector<1x1x16x16xf32> to vector<16x16xf32>
    %166 = vector.shape_cast %163 : vector<16x16xf32> to vector<1x1x16x16xf32>
    tpu.vector_store %arg2[%c0_28, %c0_29, %c0_30, %c0_31], %166 {strides = array<i32>} : memref<2x1x16x16xf32, #tpu.memory_space<vmem>>, vector<1x1x16x16xf32>,
    %c16_i32_32 = arith.constant 16 : i32
    %167 = tpu.dynamic_rotate %162 by %c16_i32_32 dim 1 : vector<16x32xf32>, i32 -> vector<16x32xf32>
    %168 = vector.extract_strided_slice %167 {offsets = [0, 0], sizes = [16, 16], strides = [1, 1]} : vector<16x32xf32> to vector<16x16xf32>
    %c1_33 = arith.constant 1 : index
    %c0_34 = arith.constant 0 : index
    %c0_35 = arith.constant 0 : index
    %c0_36 = arith.constant 0 : index
    %169 = vector.load %arg2[%c1_33, %c0_34, %c0_35, %c0_36] : memref<2x1x16x16xf32, #tpu.memory_space<vmem>>, vector<1x1x16x16xf32>
    %170 = vector.shape_cast %169 : vector<1x1x16x16xf32> to vector<16x16xf32>
    %171 = vector.shape_cast %168 : vector<16x16xf32> to vector<1x1x16x16xf32>
    tpu.vector_store %arg2[%c1_33, %c0_34, %c0_35, %c0_36], %171 {strides = array<i32>} : memref<2x1x16x16xf32, #tpu.memory_space<vmem>>, vector<1x1x16x16xf32>,
    return
  }
}

</mosaic_0001>

<bundles_post_ra>
// kernel: tpu_custom_call.1
= control target key start
LH: loop header
LB: loop body
LE: loop exit
PB: predicated region body
PF: predicated region fallthrough
CT: control target
= control target key end

     0   :  { %7 = vsyncpa [#allocation5], 0  ;;  %s769_s0 = inlined_call_operand.hbm [shape: f32[27], index: 0, kind: input, shape index: {}]   ;;  %s770_s1 = inlined_call_operand.hbm [shape: f32[3,16,32], index: 1, kind: input, shape index: {}]   ;;  %s771_s2 = inlined_call_operand.hbm [shape: f32[2,1,16,16], index: 2, kind: output, shape index: {}]  }
   0x1   :  { %8 = vsyncpa [#allocation3], 0 }
   0x2   :  { %9 = vsyncpa [#allocation4], 0  ;;  %s390_s11 = scalar_lea.hbm %s769_s0, 16 }
   0x3   :  { %p391_p0 = scmp.ne.s32.totalorder %s769_s0, %s390_s11  ;;  %p394_p1 = scmp.lt.u32.totalorder %s390_s11, %s769_s0 }
   0x5   :  { %p396_p2 = pnand %p394_p1, %p391_p0 }
   0x7   :  { %399 = shalt.err (!%p396_p2)
}
   0x8   :  { %s450_s16 = smov [#allocation2]   ;;  %s451_s19 = smov [#allocation6]  }
   0x9   :  { %17 = dma.hbm_to_smem %s769_s0, 16, %s450_s16, [#allocation5]  }
   0xa   :  { %s23_s20 = sshll.u32 %s451_s19, 4  ;;  %s400_s23 = scalar_lea.hbm %s770_s1, 768  ;;  %s24_s20 = int_to_ptr.vmem [resolvable:$true] %s23_s20 }
   0xb   :  { %p401_p3 = scmp.ne.s32.totalorder %s770_s1, %s400_s23  ;;  %p404_p4 = scmp.lt.u32.totalorder %s400_s23, %s770_s1 }
   0xd   :  { %p406_p5 = pnand %p404_p4, %p401_p3 }
   0xf   :  { %409 = shalt.err (!%p406_p5)
}
  0x10   :  { %s410_s28 = scalar_lea.vmem %s24_s20, 768  ;;  %p415_p7 = scmp.lt.s32.totalorder %s24_s20, %s24_s20 }
  0x11   :  { %p411_p6 = scmp.ne.s32.totalorder %s24_s20, %s410_s28  ;;  %p416_p8 = scmp.lt.s32.totalorder %s410_s28, %s410_s28 }
  0x13   :  { %p417_p9 = por %p416_p8, %p415_p7 }
  0x15   :  { %p418_p10 = pnand %p417_p9, %p411_p6 }
  0x17   :  { %421 = shalt.err (!%p418_p10)
}
  0x18   :  { %s452_s0 = smov 128   ;;  %s453_s29 = smov 8  }
  0x19   :  { %29 = dma.hbm_to_vmem [thread:$0]  %s770_s1, 768, %s24_s20, [#allocation3], %s452_s0, %s452_s0, %s453_s29  }
  0x1a   :  { %444 = dma.done.wait [#allocation5], 16  }
  0x1b   :  { %445 = vsyncadd [#allocation5], 4294967280 }
  0x1c   :  { %446 = dma.done.wait [#allocation3], 768  }
  0x1d   :  { %447 = vsyncadd [#allocation3], 4294966528 }
  0x1e   :  { %36 = sfence }
  0x1f   :  { %v37_v0 = vlaneseq  ;;  %v501_v1 = vld [vmem:[#allocation6] sm:$0xff]  ;;  %v503_v2 = vld [vmem:[#allocation6 + $0x8] sm:$0xff]  ;;  %v505_v3 = vld [vmem:[#allocation6 + $0x10] sm:$0xff]  ;;  %s507_s4 = sld [smem:[#allocation2]]  ;;  %s527_s1 = sld [smem:[#allocation2 + $0x3]]  ;;  %vm158_vm4 = vcmask 1047808  }
  0x20   :  { %v62_v4 = vrot.slane %v501_v1, 7  ;;  %v63_v5 = vrot.slane %v503_v2, 7  ;;  %v69_v6 = vrot.slane %v501_v1, 1  ;;  %v70_v7 = vrot.slane %v503_v2, 1  ;;  %v513_v8 = vld [vmem:[#allocation6 + $0x18] sm:$0xff]  ;;  %v515_v9 = vld [vmem:[#allocation6 + $0x20] sm:$0xff] }
  0x21   :  { %v38_v10 = vshrl.u32 %v37_v0, 7  ;;  %v79_v11 = vrot.slane %v505_v3, 7  ;;  %v80_v12 = vrot.slane %v513_v8, 7  ;;  %v85_v13 = vrot.slane %v505_v3, 1  ;;  %v521_v14 = vld [vmem:[#allocation6 + $0x28] sm:$0xff]  ;;  %s530_s5 = sld [smem:[#allocation2 + $0x6]] }
  0x22   :  { %v86_v15 = vrot.slane %v513_v8, 1  ;;  %v94_v16 = vrot.slane %v515_v9, 7  ;;  %v95_v17 = vrot.slane %v521_v14, 7  ;;  %v100_v18 = vrot.slane %v515_v9, 1  ;;  %s540_s6 = sld [smem:[#allocation2 + $0x9]]  ;;  %s542_s7 = sld [smem:[#allocation2 + $0xc]] }
  0x23   :  { %vm54_vm0 = vcmp.ge.s32.totalorder %v38_v10, 1  ;;  %vm64_vm1 = vcmp.lt.s32.totalorder %v38_v10, 1  ;;  %vm71_vm2 = vcmp.lt.s32.totalorder %v38_v10, 7  ;;  %v101_v19 = vrot.slane %v521_v14, 1  ;;  %s554_s8 = sld [smem:[#allocation2 + $0xf]]  ;;  %s556_s9 = sld [smem:[#allocation2 + $0x12]] }
  0x24   :  { %v66_v20 = vsel %vm64_vm1, %v63_v5, %v62_v4  ;;  %v534_v21 = vsel %vm71_vm2, %v69_v6, %v70_v7  ;;  %v82_v22 = vsel %vm64_vm1, %v80_v12, %v79_v11  ;;  %v538_v23 = vsel %vm71_vm2, %v85_v13, %v86_v15  ;;  %s562_s10 = sld [smem:[#allocation2 + $0x15]]  ;;  %s564_s11 = sld [smem:[#allocation2 + $0x18]] }
  0x25   :  { %v545_v24 = vsel %vm54_vm0, %v66_v20, 0.0  ;;  %v548_v25 = vsel %vm54_vm0, %v82_v22, 0.0  ;;  %v97_v26 = vsel %vm64_vm1, %v95_v17, %v94_v16  ;;  %v552_v27 = vsel %vm71_vm2, %v100_v18, %v101_v19  ;;  %s572_s12 = sld [smem:[#allocation2 + $0x2]]  ;;  %s574_s13 = sld [smem:[#allocation2 + $0x5]] }
  0x26   :  { %v559_v28 = vsel %vm54_vm0, %v97_v26, 0.0  ;;  %v107_v29 = vstv %s507_s4  ;;  %v39_v30 = vadd.s32 8, %v38_v10  ;;  %v567_v31 = vsel %vm64_vm1, %v62_v4, %v63_v5  ;;  %s582_s14 = sld [smem:[#allocation2 + $0x8]]  ;;  %s584_s15 = sld [smem:[#allocation2 + $0xb]] }
  0x27   :  { %v108_v32 = vmul.f32 %v107_v29, %v545_v24  ;;  %v73_v33 = vsel %vm71_vm2, %v70_v7, %v69_v6  ;;  %v578_v34 = vsel %vm64_vm1, %v79_v11, %v80_v12  ;;  %v88_v35 = vsel %vm71_vm2, %v86_v15, %v85_v13  ;;  %s592_s16 = sld [smem:[#allocation2 + $0xe]]  ;;  %s594_s17 = sld [smem:[#allocation2 + $0x11]] }
  0x28   :  { %v111_v36 = vstv %s527_s1  ;;  %vm57_vm3 = vcmp.le.s32.totalorder %v39_v30, 14  ;;  %v587_v37 = vsel %vm64_vm1, %v94_v16, %v95_v17  ;;  %v103_v38 = vsel %vm71_vm2, %v101_v19, %v100_v18  ;;  %s603_s18 = sld [smem:[#allocation2 + $0x14]]  ;;  %s605_s19 = sld [smem:[#allocation2 + $0x17]] }
  0x29   :  { %v112_v39 = vmul.f32 %v111_v36, %v501_v1  ;;  %v117_v40 = vstv %s530_s5  ;;  %v596_v41 = vsel %vm57_vm3, %v73_v33, 0.0  ;;  %v598_v42 = vsel %vm57_vm3, %v88_v35, 0.0  ;;  %s616_s20 = sld [smem:[#allocation2 + $0x1a]]  ;;  %s454_s21 = smov 32  }
  0x2a   :  { %v118_v43 = vmul.f32 %v117_v40, %v534_v21  ;;  %v123_v44 = vstv %s540_s6  ;;  %v127_v45 = vstv %s542_s7  ;;  %v607_v46 = vsel %vm57_vm3, %v103_v38, 0.0  ;;  %s455_s22 = smov 97   ;;  %s456_s23 = smov 127  }
  0x2b   :  { %v114_v47 = vadd.f32 %v112_v39, %v108_v32  ;;  %v124_v48 = vmul.f32 %v123_v44, %v548_v25  ;;  %v128_v49 = vmul.f32 %v127_v45, %v505_v3  ;;  %v133_v50 = vstv %s554_s8  ;;  %s680_s24 = sld [smem:[#allocation2 + $0x1]]  ;;  %s682_s25 = sld [smem:[#allocation2 + $0x4]] }
  0x2c   :  { %v134_v51 = vmul.f32 %v133_v50, %v538_v23  ;;  %v139_v52 = vstv %s556_s9  ;;  %v143_v53 = vstv %s562_s10  ;;  %v149_v54 = vstv %s564_s11  ;;  %s684_s26 = sld [smem:[#allocation2 + $0xa]]  ;;  %s686_s27 = sld [smem:[#allocation2 + $0xd]] }
  0x2d   :  { %v120_v55 = vadd.f32 %v118_v43, %v114_v47  ;;  %v130_v56 = vadd.f32 %v128_v49, %v124_v48  ;;  %v140_v57 = vmul.f32 %v139_v52, %v559_v28  ;;  %v144_v58 = vmul.f32 %v143_v53, %v515_v9  ;;  %s688_s28 = sld [smem:[#allocation2 + $0x7]]  ;;  %s690_s30 = sld [smem:[#allocation2 + $0x10]] }
  0x2e   :  { %v150_v59 = vmul.f32 %v149_v54, %v552_v27  ;;  %v234_v60 = vstv %s572_s12  ;;  %v238_v61 = vstv %s574_s13  ;;  %v244_v62 = vstv %s582_s14  ;;  %s692_s3 = sld [smem:[#allocation2 + $0x13]]  ;;  %s694_s4 = sld [smem:[#allocation2 + $0x16]] }
  0x2f   :  { %v136_v63 = vadd.f32 %v134_v51, %v130_v56  ;;  %v146_v4 = vadd.f32 %v144_v58, %v140_v57  ;;  %v235_v5 = vmul.f32 %v234_v60, %v545_v24  ;;  %v239_v6 = vmul.f32 %v238_v61, %v501_v1  ;;  %s700_s1 = sld [smem:[#allocation2 + $0x19]]  ;;  %s457_s5 = smov 112  }
  0x30   :  { %v245_v7 = vmul.f32 %v244_v62, %v534_v21  ;;  %v250_v10 = vstv %s584_s15  ;;  %v254_v11 = vstv %s592_s16  ;;  %v260_v12 = vstv %s594_s17  ;;  %s458_s6 = smov [#allocation7]  }
  0x31   :  { %v152_v13 = vadd.f32 %v150_v59, %v146_v4  ;;  %v154_v15 = vadd.f32 %v136_v63, %v120_v55  ;;  %v241_v16 = vadd.f32 %v239_v6, %v235_v5  ;;  %v251_v17 = vmul.f32 %v250_v10, %v548_v25  ;;  %s342_s7 = sshll.u32 %s458_s6, 4  ;;  %s343_s7 = int_to_ptr.vmem [resolvable:$true] %s342_s7 }
  0x32   :  { %v255_v18 = vmul.f32 %v254_v11, %v505_v3  ;;  %v261_v19 = vmul.f32 %v260_v12, %v538_v23  ;;  %v266_v20 = vstv %s603_s18  ;;  %v270_v22 = vstv %s605_s19  ;;  %s422_s8 = scalar_lea.vmem %s343_s7, 512  ;;  %p427_p12 = scmp.lt.s32.totalorder %s343_s7, %s343_s7 }
  0x33   :  { %v635_v26 = vadd.f32 %v154_v15, %v152_v13  ;;  %v247_v30 = vadd.f32 %v245_v7, %v241_v16  ;;  %v267_v32 = vmul.f32 %v266_v20, %v559_v28  ;;  %v271_v33 = vmul.f32 %v270_v22, %v515_v9  ;;  %p423_p11 = scmp.ne.s32.totalorder %s343_s7, %s422_s8  ;;  %p428_p13 = scmp.lt.s32.totalorder %s422_s8, %s422_s8 }
  0x34   :  { %v257_v35 = vadd.f32 %v255_v18, %v251_v17  ;;  %v276_v38 = vstv %s616_s20  ;;  %v109_v39 = vmul.f32 %v107_v29, %v567_v31  ;;  %v113_v43 = vmul.f32 %v111_v36, %v503_v2 }
  0x35   :  { %159 = vrot.lane.b32.xlu0 %v635_v26, %s454_s21  ;;  %v273_v47 = vadd.f32 %v271_v33, %v267_v32  ;;  %v277_v48 = vmul.f32 %v276_v38, %v552_v27  ;;  %v119_v49 = vmul.f32 %v117_v40, %v596_v41  ;;  %v125_v51 = vmul.f32 %v123_v44, %v578_v34  ;;  %p429_p0 = por %p428_p13, %p427_p12 }
  0x36   :  { %v263_v55 = vadd.f32 %v261_v19, %v257_v35  ;;  %v115_v56 = vadd.f32 %v113_v43, %v109_v39  ;;  %v129_v57 = vmul.f32 %v127_v45, %v513_v8  ;;  %v135_v58 = vmul.f32 %v133_v50, %v598_v42 }
  0x37   :  { %v279_v29 = vadd.f32 %v277_v48, %v273_v47  ;;  %v141_v36 = vmul.f32 %v139_v52, %v587_v37  ;;  %v145_v59 = vmul.f32 %v143_v53, %v521_v14  ;;  %v151_v63 = vmul.f32 %v149_v54, %v607_v46  ;;  %p430_p1 = pnand %p429_p0, %p423_p11 }
  0x38   :  { %v281_v4 = vadd.f32 %v263_v55, %v247_v30  ;;  %v121_v5 = vadd.f32 %v119_v49, %v115_v56  ;;  %v131_v6 = vadd.f32 %v129_v57, %v125_v51  ;;  %v236_v40 = vmul.f32 %v234_v60, %v567_v31 }
  0x39   :  { %v147_v7 = vadd.f32 %v145_v59, %v141_v36  ;;  %v240_v44 = vmul.f32 %v238_v61, %v503_v2  ;;  %v246_v13 = vmul.f32 %v244_v62, %v596_v41  ;;  %v252_v45 = vmul.f32 %v250_v10, %v578_v34 }
  0x3a   :  { %v283_v50 = vadd.f32 %v281_v4, %v279_v29  ;;  %v137_v15 = vadd.f32 %v135_v58, %v131_v6  ;;  %v256_v52 = vmul.f32 %v254_v11, %v513_v8  ;;  %v262_v53 = vmul.f32 %v260_v12, %v598_v42 }
  0x3b   :  { %v153_v16 = vadd.f32 %v151_v63, %v147_v7  ;;  %v242_v54 = vadd.f32 %v240_v44, %v236_v40  ;;  %v268_v17 = vmul.f32 %v266_v20, %v587_v37  ;;  %v272_v18 = vmul.f32 %v270_v22, %v521_v14 }
  0x3c   :  { %285 = vrot.lane.b32.xlu1 %v283_v50, %s454_s21  ;;  %v155_v60 = vadd.f32 %v137_v15, %v121_v5  ;;  %v258_v61 = vadd.f32 %v256_v52, %v252_v45  ;;  %v278_v62 = vmul.f32 %v276_v38, %v607_v46  ;;  %v186_v59 = vstv %s682_s25 }
  0x3d   :  { %v248_v19 = vadd.f32 %v246_v13, %v242_v54  ;;  %v274_v10 = vadd.f32 %v272_v18, %v268_v17  ;;  %v198_v63 = vstv %s684_s26  ;;  %v202_v4 = vstv %s686_s27 }
  0x3e   :  { %v157_v30 = vadd.f32 %v155_v60, %v153_v16  ;;  %v264_v32 = vadd.f32 %v262_v53, %v258_v61  ;;  %v187_v6 = vmul.f32 %v186_v59, %v501_v1  ;;  %v192_v40 = vstv %s688_s28 }
  0x3f   :  { %v280_v33 = vadd.f32 %v278_v62, %v274_v10  ;;  %v199_v7 = vmul.f32 %v198_v63, %v548_v25  ;;  %v203_v44 = vmul.f32 %v202_v4, %v505_v3  ;;  %v208_v13 = vstv %s690_s30 }
  0x40   :  { %162 = vrot.lane.b32.xlu0 %v157_v30, %s454_s21  ;;  %v282_v11 = vadd.f32 %v264_v32, %v248_v19  ;;  %v214_v45 = vstv %s692_s3  ;;  %v193_v52 = vmul.f32 %v192_v40, %v534_v21  ;;  %v209_v16 = vmul.f32 %v208_v13, %v538_v23 }
  0x41   :  { %v205_v53 = vadd.f32 %v203_v44, %v199_v7  ;;  %v215_v54 = vmul.f32 %v214_v45, %v559_v28  ;;  %v224_v17 = vstv %s700_s1  ;;  %v41_v1 = vand.u32 127, %v37_v0 }
  0x42   :  { %v284_v12 = vadd.f32 %v282_v11, %v280_v33  ;;  %v225_v3 = vmul.f32 %v224_v17, %v552_v27  ;;  %v188_v62 = vmul.f32 %v186_v59, %v503_v2  ;;  %v200_v21 = vmul.f32 %v198_v63, %v578_v34 }
  0x43   :  { %v211_v25 = vadd.f32 %v209_v16, %v205_v53  ;;  %v204_v23 = vmul.f32 %v202_v4, %v513_v8  ;;  %v46_v19 = vand.u32 15, %v41_v1  ;;  %v210_v0 = vmul.f32 %v208_v13, %v598_v42 }
  0x44   :  { %288 = vrot.lane.b32.xlu1 %v284_v12, %s454_s21  ;;  %v216_v33 = vmul.f32 %v214_v45, %v587_v37  ;;  %vm311_vm7 = vcmask 130048  }
  0x45   :  { %v206_v32 = vadd.f32 %v204_v23, %v200_v21  ;;  %vm725_vm5 = vcmp.ge.s32.totalorder %v46_v19, 1  ;;  %vm732_vm6 = vcmp.le.s32.totalorder %v46_v19, 14 }
  0x47   :  { %v212_v11 = vadd.f32 %v210_v0, %v206_v32 }
  0xa7   :  { %v160_v20 = vpop.permute.xlu0 %159 }
  0xa8   :  { %v161_v22 = vsel %vm158_vm4, %v160_v20, %v635_v26  ;;  %v226_v20 = vmul.f32 %v224_v17, %v607_v46 }
  0xa9   :  { %165 = vrot.lane.b32.xlu0 %v161_v22, %s454_s21 }
  0xae   :  { %v286_v35 = vpop.permute.xlu1 %285 }
  0xaf   :  { %v287_v38 = vsel %vm158_vm4, %v286_v35, %v283_v50 }
  0xb0   :  { %291 = vrot.lane.b32.xlu0 %v287_v38, %s454_s21 }
  0xb2   :  { %v163_v39 = vpop.permute.xlu0 %162 }
  0xb3   :  { %v164_v43 = vsel %vm158_vm4, %v163_v39, %v157_v30 }
  0xb4   :  { %167 = vrot.lane.b32.xlu1 %v164_v43, %s454_s21 }
  0xb6   :  { %v289_v47 = vpop.permute.xlu1 %288 }
  0xb7   :  { %v290_v48 = vsel %vm158_vm4, %v289_v47, %v284_v12 }
  0xb8   :  { %293 = vrot.lane.b32.xlu1 %v290_v48, %s454_s21 }
 0x11b   :  { %v166_v49 = vpop.permute.xlu0 %165 }
 0x11c   :  { %v169_v51 = vsel %vm158_vm4, %v166_v49, %v635_v26  ;;  %v182_v26 = vstv %s680_s24 }
 0x11d   :  { %173 = vrot.lane.b32.xlu0 %v169_v51, %s455_s22  ;;  %v183_v5 = vmul.f32 %v182_v26, %v545_v24  ;;  %v184_v61 = vmul.f32 %v182_v26, %v567_v31 }
 0x11f   :  { %v189_v15 = vadd.f32 %v187_v6, %v183_v5 }
 0x121   :  { %v195_v18 = vadd.f32 %v193_v52, %v189_v15 }
 0x122   :  { %v292_v55 = vpop.permute.xlu0 %291 }
 0x123   :  { %v295_v56 = vsel %vm158_vm4, %v292_v55, %v283_v50  ;;  %v218_v50 = vstv %s694_s4  ;;  %v229_v10 = vadd.f32 %v211_v25, %v195_v18 }
 0x124   :  { %299 = vrot.lane.b32.xlu0 %v295_v56, %s456_s23  ;;  %v219_v24 = vmul.f32 %v218_v50, %v515_v9  ;;  %v194_v9 = vmul.f32 %v192_v40, %v596_v41  ;;  %v220_v27 = vmul.f32 %v218_v50, %v521_v14 }
 0x126   :  { %v168_v57 = vpop.permute.xlu1 %167  ;;  %v221_v60 = vadd.f32 %v219_v24, %v215_v54 }
 0x127   :  { %v170_v58 = vsel %vm158_vm4, %v168_v57, %v157_v30  ;;  %v190_v30 = vadd.f32 %v188_v62, %v184_v61 }
 0x128   :  { %175 = vrot.lane.b32.xlu1 %v170_v58, %s455_s22  ;;  %v227_v28 = vadd.f32 %v225_v3, %v221_v60 }
 0x129   :  { %v196_v8 = vadd.f32 %v194_v9, %v190_v30 }
 0x12a   :  { %v294_v29 = vpop.permute.xlu1 %293  ;;  %v231_v34 = vadd.f32 %v229_v10, %v227_v28 }
 0x12b   :  { %v296_v36 = vsel %vm158_vm4, %v294_v29, %v284_v12  ;;  %v222_v12 = vadd.f32 %v220_v27, %v216_v33  ;;  %v230_v22 = vadd.f32 %v212_v11, %v196_v8 }
 0x12c   :  { %301 = vrot.lane.b32.xlu1 %v296_v36, %s456_s23 }
 0x12d   :  { %v228_v14 = vadd.f32 %v226_v20, %v222_v12 }
 0x12f   :  { %v232_v43 = vadd.f32 %v230_v22, %v228_v14 }
 0x18f   :  { %v174_v2 = vpop.permute.xlu0 %173 }
 0x190   :  { %v179_v41 = vsel %vm725_vm5, %v174_v2, 0.0 }
 0x191   :  { %v307_v37 = vadd.f32 %v231_v34, %v179_v41 }
 0x196   :  { %v300_v35 = vpop.permute.xlu0 %299 }
 0x197   :  { %v305_v38 = vsel %vm732_vm6, %v300_v35, 0.0 }
 0x198   :  { %v309_v39 = vadd.f32 %v307_v37, %v305_v38 }
 0x19a   :  { %v176_v47 = vpop.permute.xlu1 %175  ;;  %314 = vrot.lane.b32.xlu0 %v309_v39, %s454_s21  ;;  %312 = vst.msk [vmem:[#allocation7] sm:$0xff] %vm311_vm7, %v309_v39 }
 0x19b   :  { %v180_v46 = vsel %vm725_vm5, %v176_v47, 0.0 }
 0x19c   :  { %v308_v48 = vadd.f32 %v232_v43, %v180_v46 }
 0x19e   :  { %v302_v49 = vpop.permute.xlu1 %301 }
 0x19f   :  { %v306_v51 = vsel %vm732_vm6, %v302_v49, 0.0 }
 0x1a0   :  { %v310_v55 = vadd.f32 %v308_v48, %v306_v51 }
 0x1a2   :  { %317 = vrot.lane.b32.xlu1 %v310_v55, %s454_s21  ;;  %313 = vst.msk [vmem:[#allocation7 + $0x8] sm:$0xff] %vm311_vm7, %v310_v55 }
 0x20c   :  { %v315_v56 = vpop.permute.xlu0 %314 }
 0x20d   :  { %v316_v57 = vsel %vm158_vm4, %v315_v56, %v309_v39 }
 0x20e   :  { %320 = vrot.lane.b32.xlu0 %v316_v57, %s454_s21 }
 0x214   :  { %v318_v58 = vpop.permute.xlu1 %317 }
 0x215   :  { %v319_v29 = vsel %vm158_vm4, %v318_v58, %v310_v55 }
 0x216   :  { %322 = vrot.lane.b32.xlu1 %v319_v29, %s454_s21 }
 0x280   :  { %v321_v36 = vpop.permute.xlu0 %320 }
 0x281   :  { %v324_v26 = vsel %vm158_vm4, %v321_v36, %v309_v39 }
 0x282   :  { %328 = vrot.lane.b32.xlu0 %v324_v26, %s457_s5 }
 0x288   :  { %v323_v59 = vpop.permute.xlu1 %322 }
 0x289   :  { %v325_v63 = vsel %vm158_vm4, %v323_v59, %v310_v55 }
 0x28a   :  { %330 = vrot.lane.b32.xlu1 %v325_v63, %s457_s5 }
 0x2f4   :  { %v329_v4 = vpop.permute.xlu0 %328 }
 0x2f5   :  { %335 = vst.msk [vmem:[#allocation7 + $0x10] sm:$0xff] %vm311_vm7, %v329_v4 }
 0x2fc   :  { %v331_v5 = vpop.permute.xlu1 %330 }
 0x2fd   :  { %336 = vst.msk [vmem:[#allocation7 + $0x18] sm:$0xff] %vm311_vm7, %v331_v5 }
 0x2fe   :  { %433 = shalt.err (!%p430_p1)
}
 0x2ff   :  { %s434_s11 = scalar_lea.hbm %s771_s2, 512 }
 0x300   :  { %p435_p2 = scmp.ne.s32.totalorder %s771_s2, %s434_s11  ;;  %p438_p3 = scmp.lt.u32.totalorder %s434_s11, %s771_s2 }
 0x302   :  { %p440_p4 = pnand %p438_p3, %p435_p2 }
 0x304   :  { %443 = shalt.err (!%p440_p4)
}
 0x305   :  { %348 = dma.vmem_to_hbm [thread:$0]  %s343_s7, 512, %s771_s2, [#allocation4], %s452_s0, %s452_s0, %s453_s29  }
 0x306   :  { %448 = dma.done.wait [#allocation4], 512  }
 0x307   :  { %449 = vsyncadd [#allocation4], 4294966784 }
 0x308   :  { %352 = vsyncpa [#allocation3], 1 }
 0x309   :  { %353 = vsyncpa [#allocation4], 1 }
 0x30a   :  { %354 = vsyncpa [#allocation5], 1 }

</bundles_post_ra>
